<compile_context>
chip_gen: v5e
topology: v5e:2x2
jax: 0.10.0
libtpu: 0.0.40
codegen_flags: <defaults>
</compile_context>

<pallas_src>
import functools

import jax
import jax.numpy as jnp
from jax.experimental import pallas as pl
from jax.experimental.pallas import tpu as pltpu

EPS = 1e-6


def _round_up(v, m):
    return (v + m - 1) // m * m


def _normalize_and_write(x, alpha_ref, gamma_ref, out_ref, d_actual):
    """Normalizator over the real D feature columns (padded cols are zero)."""
    dp = x.shape[-1]
    inv_d = jnp.float32(1.0 / d_actual)
    # torch.std is unbiased (Bessel). Guard D==1 (torch is NaN there anyway).
    inv_dm1 = jnp.float32(1.0 / max(d_actual - 1, 1))
    mean = jnp.sum(x, axis=-1, keepdims=True) * inv_d          # padded cols are 0
    cen = x - mean
    ss = jnp.sum(cen * cen, axis=-1, keepdims=True)
    # each of the (Dp - D) padded columns contributed (-mean)^2; remove them.
    ss = ss - jnp.float32(dp - d_actual) * (mean * mean)
    std = jnp.sqrt(ss * inv_dm1)
    inv = 1.0 / (std + jnp.float32(EPS))                       # exact; only (TN,1)
    out_ref[...] = (alpha_ref[0, 0] * cen * inv + gamma_ref[0, 0]).astype(out_ref.dtype)


def encoder_kernel_resident(x_ref, mask_ref, w_ref, b_ref, alpha_ref, gamma_ref,
                            out_ref, *, d_actual, n_layers):
    # x_ref:(TN,Dp) f32, mask_ref:(TN,1) f32, w_ref:(L,Dp,Dp) bf16 (VMEM-resident),
    # b_ref:(L,1,Dp) f32, alpha/gamma:(1,1) f32.
    x = x_ref[...].astype(jnp.float32)
    m = mask_ref[...]                                          # (TN,1), fused broadcast
    for l in range(n_layers):                                  # static unroll (L small)
        h = jnp.dot(x.astype(jnp.bfloat16), w_ref[l],
                    preferred_element_type=jnp.float32) + b_ref[l]
        x = x + jnp.maximum(h, 0.0) * m
    _normalize_and_write(x, alpha_ref, gamma_ref, out_ref, d_actual)


def encoder_kernel_stream(x_ref, mask_ref, w_hbm, b_ref, alpha_ref, gamma_ref,
                          out_ref, wbuf, sem, *, d_actual, n_layers):
    # Same as resident kernel, but w_hbm:(L,Dp,Dp) bf16 stays in HBM; per-layer
    # weights are double-buffered into wbuf:(2,Dp,Dp) with manual async copies.
    def fetch(l, slot):
        pltpu.make_async_copy(w_hbm.at[l], wbuf.at[slot], sem.at[slot]).start()

    fetch(0, 0)
    x = x_ref[...].astype(jnp.float32)
    m = mask_ref[...]
    for l in range(n_layers):                                  # static unroll
        slot = l & 1
        pltpu.make_async_copy(w_hbm.at[l], wbuf.at[slot], sem.at[slot]).wait()
        if l + 1 < n_layers:
            fetch(l + 1, 1 - slot)                             # prefetch next layer
        h = jnp.dot(x.astype(jnp.bfloat16), wbuf[slot],
                    preferred_element_type=jnp.float32) + b_ref[l]
        x = x + jnp.maximum(h, 0.0) * m
    _normalize_and_write(x, alpha_ref, gamma_ref, out_ref, d_actual)


def encoder_forward(x, mask, w, b, alpha, gamma, *, tile_rows=1024,
                    force_stream_weights=False):
    """x: (B, S, D), mask: (B, S), w: (L, D, D), b: (L, D) -> (B, S, D)."""
    B, S, D = x.shape
    L = w.shape[0]
    N = B * S

    # Lane-dense feature dim (multiple of 128); sublane-aligned row tiles.
    Dp = _round_up(max(D, 128), 128)

    # --- generation-aware VMEM budget ---
    try:
        info = pltpu.get_tpu_info()
        vmem_cap = int(getattr(info, "vmem_capacity_bytes", 64 * 1024 * 1024))
    except Exception:
        vmem_cap = 64 * 1024 * 1024          # conservative (v7x per-TC)

    w_bytes_resident = L * Dp * Dp * 2       # bf16, single-buffered
    stream_weights = force_stream_weights or (w_bytes_resident > int(0.30 * vmem_cap))

    def footprint(tn):
        io = 2 * 2 * tn * Dp * 4             # x + out tiles, double-buffered, f32
        io += 2 * tn * 1 * 4                 # mask tiles
        tmp = 5 * tn * Dp * 4 + tn * Dp * 2  # ~5 live f32 temporaries + bf16 cast
        if stream_weights:
            wgt = 2 * Dp * Dp * 2            # per-layer weight scratch, double-buffered
        else:
            wgt = w_bytes_resident
        wgt += L * Dp * 4                    # biases
        return io + tmp + wgt

    budget = int(0.70 * vmem_cap)            # tile-shrink gate
    TN = min(tile_rows, _round_up(N, 8))
    while TN > 8 and footprint(TN) > budget:
        TN = max(8, _round_up(TN // 2, 8))
    # Guarantee >= 2 grid steps so both TensorCores get work on dual-TC parts.
    while TN > 8 and _round_up(N, TN) // TN < 2:
        TN = max(8, _round_up(TN // 2, 8))
    Np = _round_up(N, TN)

    # --- host-side layouts (fast path skips the pad/slice HBM passes) ---
    x_flat = x.reshape(N, D)
    m_flat = mask.reshape(N)
    if D == Dp and N == Np:
        x2 = x_flat.astype(jnp.float32)
        m2 = m_flat.astype(jnp.float32).reshape(N, 1)
        needs_slice = False
    else:
        x2 = jnp.zeros((Np, Dp), jnp.float32).at[:N, :D].set(x_flat.astype(jnp.float32))
        m2 = jnp.zeros((Np, 1), jnp.float32).at[:N, 0].set(m_flat.astype(jnp.float32))
        needs_slice = True

    if D == Dp:
        wp = w.astype(jnp.bfloat16)
        bp = b.astype(jnp.float32).reshape(L, 1, Dp)
    else:
        wp = jnp.zeros((L, Dp, Dp), jnp.bfloat16).at[:, :D, :D].set(w.astype(jnp.bfloat16))
        bp = jnp.zeros((L, 1, Dp), jnp.float32).at[:, 0, :D].set(b.astype(jnp.float32))
    a2 = jnp.asarray(alpha, jnp.float32).reshape(1, 1)
    g2 = jnp.asarray(gamma, jnp.float32).reshape(1, 1)

    vmem_limit = int(min(int(0.75 * vmem_cap),
                         max(32 * 1024 * 1024, footprint(TN) + (4 << 20))))

    def make_call(single_buffer_consts):
        const_kw = ({"pipeline_mode": pl.Buffered(1)} if single_buffer_consts else {})
        x_spec = pl.BlockSpec((TN, Dp), lambda i: (i, 0))
        m_spec = pl.BlockSpec((TN, 1), lambda i: (i, 0))
        b_spec = pl.BlockSpec((L, 1, Dp), lambda i: (0, 0, 0), **const_kw)
        s_spec = pl.BlockSpec((1, 1), lambda i: (0, 0), **const_kw)
        out_spec = pl.BlockSpec((TN, Dp), lambda i: (i, 0))
        if stream_weights:
            w_spec = pl.BlockSpec(memory_space=pl.ANY)        # raw HBM ref
            kernel = functools.partial(encoder_kernel_stream, d_actual=D, n_layers=L)
            scratch = [pltpu.VMEM((2, Dp, Dp), jnp.bfloat16),
                       pltpu.SemaphoreType.DMA((2,))]
        else:
            w_spec = pl.BlockSpec((L, Dp, Dp), lambda i: (0, 0, 0), **const_kw)
            kernel = functools.partial(encoder_kernel_resident, d_actual=D, n_layers=L)
            scratch = []
        return pl.pallas_call(
            kernel,
            out_shape=jax.ShapeDtypeStruct((Np, Dp), jnp.float32),
            grid=(Np // TN,),
            in_specs=[x_spec, m_spec, w_spec, b_spec, s_spec, s_spec],
            out_specs=out_spec,
            scratch_shapes=scratch,
            compiler_params=pltpu.CompilerParams(
                dimension_semantics=("parallel",),
                vmem_limit_bytes=vmem_limit),
        )

    try:
        out = make_call(True)(x2, m2, wp, bp, a2, g2)
    except Exception:
        # Fallback if pipeline_mode=Buffered(1) is rejected by this jax version.
        out = make_call(False)(x2, m2, wp, bp, a2, g2)

    if needs_slice:
        out = out[:N, :D]
    return out.reshape(B, S, D)


def encoder_reference(x, mask, w, b, alpha, gamma):
    """Pure-JAX f32 reference mirroring the PyTorch semantics."""
    B, S, D = x.shape
    m = mask[..., None].astype(jnp.float32)
    cur = x.astype(jnp.float32)
    for l in range(w.shape[0]):
        h = cur @ w[l].astype(jnp.float32) + b[l].astype(jnp.float32)
        cur = cur + jnp.maximum(h, 0.0) * m
    mean = cur.mean(axis=-1, keepdims=True)
    std = jnp.sqrt(((cur - mean) ** 2).sum(-1, keepdims=True) / (D - 1))
    return alpha * (cur - mean) / (std + EPS) + gamma


if __name__ == "__main__":
    key = jax.random.PRNGKey(0)
    kx, kw, kb, kx2, kw2, kb2 = jax.random.split(key, 6)

    # --- small demo shapes ---
    B, S, D, L = 2, 8, 32, 2
    x = jax.random.normal(kx, (B, S, D), dtype=jnp.float32)
    mask = jnp.ones((B, S), dtype=jnp.float32).at[1, -2:].set(0.0)
    # TODO(synk): the real nn.ModuleList layer class is not defined in the
    # source file; a residual masked-MLP layer with the same signature is used.
    w = 0.1 * jax.random.normal(kw, (L, D, D), dtype=jnp.float32)
    b = 0.01 * jax.random.normal(kb, (L, D), dtype=jnp.float32)
    alpha = jnp.float32(1.0)   # Normalizator init: ones / zeros
    gamma = jnp.float32(0.0)

    ref = encoder_reference(x, mask, w, b, alpha, gamma)

    # Default (resident-weights) path.
    out = jax.block_until_ready(encoder_forward(x, mask, w, b, alpha, gamma))
    assert out.shape == (B, S, D)
    # Tolerance covers bf16 MXU matmuls vs the fp32 reference.
    assert jnp.allclose(out, ref, atol=2e-2, rtol=2e-2), "resident path mismatch"

    # Weight-streaming path (forced at small shapes to validate it end-to-end).
    out_s = jax.block_until_ready(
        encoder_forward(x, mask, w, b, alpha, gamma, force_stream_weights=True))
    assert jnp.allclose(out_s, ref, atol=2e-2, rtol=2e-2), "streaming path mismatch"

    # Lane-aligned fast path (D % 128 == 0 -> no host-side pad/slice passes).
    D2 = 128
    x_fp = jax.random.normal(kx2, (B, S, D2), dtype=jnp.float32)
    w_fp = 0.1 * jax.random.normal(kw2, (L, D2, D2), dtype=jnp.float32)
    b_fp = 0.01 * jax.random.normal(kb2, (L, D2), dtype=jnp.float32)
    ref_fp = encoder_reference(x_fp, mask, w_fp, b_fp, alpha, gamma)
    out_fp = jax.block_until_ready(
        encoder_forward(x_fp, mask, w_fp, b_fp, alpha, gamma))
    assert jnp.allclose(out_fp, ref_fp, atol=2e-2, rtol=2e-2), "fast path mismatch"

    print("KERNEL_OK")
</pallas_src>

<mosaic_0001>
module attributes {stable_mosaic.version = 11 : i64} {
  func.func @encoder_kernel_resident(%arg0: i32, %arg1: memref<8x128xf32, #tpu.memory_space<vmem>>, %arg2: memref<8x1xf32, #tpu.memory_space<vmem>>, %arg3: memref<2x128x128xbf16, #tpu.memory_space<vmem>>, %arg4: memref<2x1x128xf32, #tpu.memory_space<vmem>>, %arg5: memref<1x1xf32, #tpu.memory_space<vmem>>, %arg6: memref<1x1xf32, #tpu.memory_space<vmem>>, %arg7: memref<8x128xf32, #tpu.memory_space<vmem>>) attributes {dimension_semantics = [#tpu.dimension_semantics<parallel>], iteration_bounds = array<i64: 2>, scalar_prefetch = 0 : i64, scratch_operands = 0 : i64, tpu.core_type = #tpu.core_type<tc>, window_params = [{transform_indices = @transform_0, window_bounds = array<i64: 8, 128>}, {transform_indices = @transform_1, window_bounds = array<i64: 8, 1>}, {pipeline_mode = #tpu.pipeline_mode<synchronous>, transform_indices = @transform_2, window_bounds = array<i64: 2, 128, 128>}, {pipeline_mode = #tpu.pipeline_mode<synchronous>, transform_indices = @transform_3, window_bounds = array<i64: 2, 1, 128>}, {pipeline_mode = #tpu.pipeline_mode<synchronous>, transform_indices = @transform_4, window_bounds = array<i64: 1, 1>}, {pipeline_mode = #tpu.pipeline_mode<synchronous>, transform_indices = @transform_5, window_bounds = array<i64: 1, 1>}, {transform_indices = @transform_6, window_bounds = array<i64: 8, 128>}]} {
    %c0 = arith.constant 0 : index
    %c0_0 = arith.constant 0 : index
    %0 = vector.load %arg1[%c0, %c0_0] : memref<8x128xf32, #tpu.memory_space<vmem>>, vector<8x128xf32>
    %c0_1 = arith.constant 0 : index
    %c0_2 = arith.constant 0 : index
    %1 = vector.load %arg2[%c0_1, %c0_2] : memref<8x1xf32, #tpu.memory_space<vmem>>, vector<8x1xf32>
    %2 = arith.truncf %0 : vector<8x128xf32> to vector<8x128xbf16>
    %c0_3 = arith.constant 0 : index
    %c0_4 = arith.constant 0 : index
    %c0_5 = arith.constant 0 : index
    %3 = vector.load %arg3[%c0_3, %c0_4, %c0_5] : memref<2x128x128xbf16, #tpu.memory_space<vmem>>, vector<1x128x128xbf16>
    %4 = vector.shape_cast %3 : vector<1x128x128xbf16> to vector<128x128xbf16>
    %cst = arith.constant dense<0.000000e+00> : vector<8x128xf32>
    %5 = tpu.matmul %2, %4, %cst {dimension_numbers = #tpu.dot_dimension_numbers<[1], [0], [0], [1], [0, 0, 1, 1], [], []>} : vector<8x128xbf16>, vector<128x128xbf16>, vector<8x128xf32> -> vector<8x128xf32>
    %c0_6 = arith.constant 0 : index
    %c0_7 = arith.constant 0 : index
    %c0_8 = arith.constant 0 : index
    %6 = vector.load %arg4[%c0_6, %c0_7, %c0_8] : memref<2x1x128xf32, #tpu.memory_space<vmem>>, vector<1x1x128xf32>
    %7 = vector.shape_cast %6 : vector<1x1x128xf32> to vector<1x128xf32>
    %8 = vector.broadcast %7 : vector<1x128xf32> to vector<8x128xf32>
    %9 = arith.addf %5, %8 : vector<8x128xf32>
    %cst_9 = arith.constant 0.000000e+00 : f32
    %10 = vector.broadcast %cst_9 : f32 to vector<8x128xf32>
    %11 = arith.maximumf %9, %10 : vector<8x128xf32>
    %12 = vector.broadcast %1 : vector<8x1xf32> to vector<8x128xf32>
    %13 = arith.mulf %11, %12 : vector<8x128xf32>
    %14 = arith.addf %0, %13 : vector<8x128xf32>
    %15 = arith.truncf %14 : vector<8x128xf32> to vector<8x128xbf16>
    %c1 = arith.constant 1 : index
    %c0_10 = arith.constant 0 : index
    %c0_11 = arith.constant 0 : index
    %16 = vector.load %arg3[%c1, %c0_10, %c0_11] : memref<2x128x128xbf16, #tpu.memory_space<vmem>>, vector<1x128x128xbf16>
    %17 = vector.shape_cast %16 : vector<1x128x128xbf16> to vector<128x128xbf16>
    %cst_12 = arith.constant dense<0.000000e+00> : vector<8x128xf32>
    %18 = tpu.matmul %15, %17, %cst_12 {dimension_numbers = #tpu.dot_dimension_numbers<[1], [0], [0], [1], [0, 0, 1, 1], [], []>} : vector<8x128xbf16>, vector<128x128xbf16>, vector<8x128xf32> -> vector<8x128xf32>
    %c1_13 = arith.constant 1 : index
    %c0_14 = arith.constant 0 : index
    %c0_15 = arith.constant 0 : index
    %19 = vector.load %arg4[%c1_13, %c0_14, %c0_15] : memref<2x1x128xf32, #tpu.memory_space<vmem>>, vector<1x1x128xf32>
    %20 = vector.shape_cast %19 : vector<1x1x128xf32> to vector<1x128xf32>
    %21 = vector.broadcast %20 : vector<1x128xf32> to vector<8x128xf32>
    %22 = arith.addf %18, %21 : vector<8x128xf32>
    %cst_16 = arith.constant 0.000000e+00 : f32
    %23 = vector.broadcast %cst_16 : f32 to vector<8x128xf32>
    %24 = arith.maximumf %22, %23 : vector<8x128xf32>
    %25 = vector.broadcast %1 : vector<8x1xf32> to vector<8x128xf32>
    %26 = arith.mulf %24, %25 : vector<8x128xf32>
    %27 = arith.addf %14, %26 : vector<8x128xf32>
    %cst_17 = arith.constant dense<0.000000e+00> : vector<8xf32>
    %28 = vector.multi_reduction <add>, %27, %cst_17 [1] : vector<8x128xf32> to vector<8xf32>
    %29 = vector.shape_cast %28 : vector<8xf32> to vector<8x1xf32>
    %cst_18 = arith.constant 3.125000e-02 : f32
    %30 = vector.broadcast %cst_18 : f32 to vector<8x1xf32>
    %31 = arith.mulf %29, %30 : vector<8x1xf32>
    %32 = vector.broadcast %31 : vector<8x1xf32> to vector<8x128xf32>
    %33 = arith.subf %27, %32 : vector<8x128xf32>
    %34 = arith.mulf %33, %33 : vector<8x128xf32>
    %cst_19 = arith.constant dense<0.000000e+00> : vector<8xf32>
    %35 = vector.multi_reduction <add>, %34, %cst_19 [1] : vector<8x128xf32> to vector<8xf32>
    %36 = vector.shape_cast %35 : vector<8xf32> to vector<8x1xf32>
    %37 = arith.mulf %31, %31 : vector<8x1xf32>
    %cst_20 = arith.constant 9.600000e+01 : f32
    %38 = vector.broadcast %cst_20 : f32 to vector<8x1xf32>
    %39 = arith.mulf %38, %37 : vector<8x1xf32>
    %40 = arith.subf %36, %39 : vector<8x1xf32>
    %cst_21 = arith.constant 0.0322580636 : f32
    %41 = vector.broadcast %cst_21 : f32 to vector<8x1xf32>
    %42 = arith.mulf %40, %41 : vector<8x1xf32>
    %43 = math.sqrt %42 : vector<8x1xf32>
    %cst_22 = arith.constant 9.99999997E-7 : f32
    %44 = vector.broadcast %cst_22 : f32 to vector<8x1xf32>
    %45 = arith.addf %43, %44 : vector<8x1xf32>
    %cst_23 = arith.constant 1.000000e+00 : f32
    %46 = vector.broadcast %cst_23 : f32 to vector<8x1xf32>
    %47 = arith.divf %46, %45 : vector<8x1xf32>
    %c0_24 = arith.constant 0 : index
    %c0_25 = arith.constant 0 : index
    %48 = vector.load %arg5[%c0_24, %c0_25] : memref<1x1xf32, #tpu.memory_space<vmem>>, vector<1x1xf32>
    %49 = vector.extract %48[0, 0] : f32 from vector<1x1xf32>
    %50 = vector.broadcast %49 : f32 to vector<8x128xf32>
    %51 = arith.mulf %50, %33 : vector<8x128xf32>
    %52 = vector.broadcast %47 : vector<8x1xf32> to vector<8x128xf32>
    %53 = arith.mulf %51, %52 : vector<8x128xf32>
    %c0_26 = arith.constant 0 : index
    %c0_27 = arith.constant 0 : index
    %54 = vector.load %arg6[%c0_26, %c0_27] : memref<1x1xf32, #tpu.memory_space<vmem>>, vector<1x1xf32>
    %55 = vector.extract %54[0, 0] : f32 from vector<1x1xf32>
    %56 = vector.broadcast %55 : f32 to vector<8x128xf32>
    %57 = arith.addf %53, %56 : vector<8x128xf32>
    %c0_28 = arith.constant 0 : index
    %c0_29 = arith.constant 0 : index
    %58 = vector.load %arg7[%c0_28, %c0_29] : memref<8x128xf32, #tpu.memory_space<vmem>>, vector<8x128xf32>
    tpu.vector_store %arg7[%c0_28, %c0_29], %57 {strides = array<i32>} : memref<8x128xf32, #tpu.memory_space<vmem>>, vector<8x128xf32>,
    return
  }
  func.func @transform_0(%arg0: i32) -> (i32, i32) {
    %c0_i32 = arith.constant 0 : i32
    %c0_i32_0 = arith.constant 0 : i32
    return %arg0, %c0_i32 : i32, i32
  }
  func.func @transform_1(%arg0: i32) -> (i32, i32) {
    %c0_i32 = arith.constant 0 : i32
    %c0_i32_0 = arith.constant 0 : i32
    return %arg0, %c0_i32 : i32, i32
  }
  func.func @transform_2(%arg0: i32) -> (i32, i32, i32) {
    %c0_i32 = arith.constant 0 : i32
    %c0_i32_0 = arith.constant 0 : i32
    %c0_i32_1 = arith.constant 0 : i32
    %c0_i32_2 = arith.constant 0 : i32
    return %c0_i32, %c0_i32_0, %c0_i32_1 : i32, i32, i32
  }
  func.func @transform_3(%arg0: i32) -> (i32, i32, i32) {
    %c0_i32 = arith.constant 0 : i32
    %c0_i32_0 = arith.constant 0 : i32
    %c0_i32_1 = arith.constant 0 : i32
    %c0_i32_2 = arith.constant 0 : i32
    return %c0_i32, %c0_i32_0, %c0_i32_1 : i32, i32, i32
  }
  func.func @transform_4(%arg0: i32) -> (i32, i32) {
    %c0_i32 = arith.constant 0 : i32
    %c0_i32_0 = arith.constant 0 : i32
    %c0_i32_1 = arith.constant 0 : i32
    return %c0_i32, %c0_i32_0 : i32, i32
  }
  func.func @transform_5(%arg0: i32) -> (i32, i32) {
    %c0_i32 = arith.constant 0 : i32
    %c0_i32_0 = arith.constant 0 : i32
    %c0_i32_1 = arith.constant 0 : i32
    return %c0_i32, %c0_i32_0 : i32, i32
  }
  func.func @transform_6(%arg0: i32) -> (i32, i32) {
    %c0_i32 = arith.constant 0 : i32
    %c0_i32_0 = arith.constant 0 : i32
    return %arg0, %c0_i32 : i32, i32
  }
}

module attributes {stable_mosaic.version = 11 : i64} {
  func.func @encoder_kernel_resident(%arg0: i32, %arg1: memref<8x128xf32, #tpu.memory_space<vmem>>, %arg2: memref<8x1xf32, #tpu.memory_space<vmem>>, %arg3: memref<2x128x128xbf16, #tpu.memory_space<vmem>>, %arg4: memref<2x1x128xf32, #tpu.memory_space<vmem>>, %arg5: memref<1x1xf32, #tpu.memory_space<vmem>>, %arg6: memref<1x1xf32, #tpu.memory_space<vmem>>, %arg7: memref<8x128xf32, #tpu.memory_space<vmem>>) attributes {dimension_semantics = [#tpu.dimension_semantics<parallel>], iteration_bounds = array<i64: 2>, scalar_prefetch = 0 : i64, scratch_operands = 0 : i64, tpu.core_type = #tpu.core_type<tc>, window_params = [{transform_indices = @transform_0, window_bounds = array<i64: 8, 128>}, {transform_indices = @transform_1, window_bounds = array<i64: 8, 1>}, {pipeline_mode = #tpu.pipeline_mode<synchronous>, transform_indices = @transform_2, window_bounds = array<i64: 2, 128, 128>}, {pipeline_mode = #tpu.pipeline_mode<synchronous>, transform_indices = @transform_3, window_bounds = array<i64: 2, 1, 128>}, {pipeline_mode = #tpu.pipeline_mode<synchronous>, transform_indices = @transform_4, window_bounds = array<i64: 1, 1>}, {pipeline_mode = #tpu.pipeline_mode<synchronous>, transform_indices = @transform_5, window_bounds = array<i64: 1, 1>}, {transform_indices = @transform_6, window_bounds = array<i64: 8, 128>}]} {
    %c0 = arith.constant 0 : index
    %c0_0 = arith.constant 0 : index
    %0 = vector.load %arg1[%c0, %c0_0] : memref<8x128xf32, #tpu.memory_space<vmem>>, vector<8x128xf32>
    %c0_1 = arith.constant 0 : index
    %c0_2 = arith.constant 0 : index
    %1 = vector.load %arg2[%c0_1, %c0_2] : memref<8x1xf32, #tpu.memory_space<vmem>>, vector<8x1xf32>
    %2 = arith.truncf %0 : vector<8x128xf32> to vector<8x128xbf16>
    %c0_3 = arith.constant 0 : index
    %c0_4 = arith.constant 0 : index
    %c0_5 = arith.constant 0 : index
    %3 = vector.load %arg3[%c0_3, %c0_4, %c0_5] : memref<2x128x128xbf16, #tpu.memory_space<vmem>>, vector<1x128x128xbf16>
    %4 = vector.shape_cast %3 : vector<1x128x128xbf16> to vector<128x128xbf16>
    %cst = arith.constant dense<0.000000e+00> : vector<8x128xf32>
    %5 = tpu.matmul %2, %4, %cst {dimension_numbers = #tpu.dot_dimension_numbers<[1], [0], [0], [1], [0, 0, 1, 1], [], []>} : vector<8x128xbf16>, vector<128x128xbf16>, vector<8x128xf32> -> vector<8x128xf32>
    %c0_6 = arith.constant 0 : index
    %c0_7 = arith.constant 0 : index
    %c0_8 = arith.constant 0 : index
    %6 = vector.load %arg4[%c0_6, %c0_7, %c0_8] : memref<2x1x128xf32, #tpu.memory_space<vmem>>, vector<1x1x128xf32>
    %7 = vector.shape_cast %6 : vector<1x1x128xf32> to vector<1x128xf32>
    %8 = vector.broadcast %7 : vector<1x128xf32> to vector<8x128xf32>
    %9 = arith.addf %5, %8 : vector<8x128xf32>
    %cst_9 = arith.constant 0.000000e+00 : f32
    %10 = vector.broadcast %cst_9 : f32 to vector<8x128xf32>
    %11 = arith.maximumf %9, %10 : vector<8x128xf32>
    %12 = vector.broadcast %1 : vector<8x1xf32> to vector<8x128xf32>
    %13 = arith.mulf %11, %12 : vector<8x128xf32>
    %14 = arith.addf %0, %13 : vector<8x128xf32>
    %15 = arith.truncf %14 : vector<8x128xf32> to vector<8x128xbf16>
    %c1 = arith.constant 1 : index
    %c0_10 = arith.constant 0 : index
    %c0_11 = arith.constant 0 : index
    %16 = vector.load %arg3[%c1, %c0_10, %c0_11] : memref<2x128x128xbf16, #tpu.memory_space<vmem>>, vector<1x128x128xbf16>
    %17 = vector.shape_cast %16 : vector<1x128x128xbf16> to vector<128x128xbf16>
    %cst_12 = arith.constant dense<0.000000e+00> : vector<8x128xf32>
    %18 = tpu.matmul %15, %17, %cst_12 {dimension_numbers = #tpu.dot_dimension_numbers<[1], [0], [0], [1], [0, 0, 1, 1], [], []>} : vector<8x128xbf16>, vector<128x128xbf16>, vector<8x128xf32> -> vector<8x128xf32>
    %c1_13 = arith.constant 1 : index
    %c0_14 = arith.constant 0 : index
    %c0_15 = arith.constant 0 : index
    %19 = vector.load %arg4[%c1_13, %c0_14, %c0_15] : memref<2x1x128xf32, #tpu.memory_space<vmem>>, vector<1x1x128xf32>
    %20 = vector.shape_cast %19 : vector<1x1x128xf32> to vector<1x128xf32>
    %21 = vector.broadcast %20 : vector<1x128xf32> to vector<8x128xf32>
    %22 = arith.addf %18, %21 : vector<8x128xf32>
    %cst_16 = arith.constant 0.000000e+00 : f32
    %23 = vector.broadcast %cst_16 : f32 to vector<8x128xf32>
    %24 = arith.maximumf %22, %23 : vector<8x128xf32>
    %25 = vector.broadcast %1 : vector<8x1xf32> to vector<8x128xf32>
    %26 = arith.mulf %24, %25 : vector<8x128xf32>
    %27 = arith.addf %14, %26 : vector<8x128xf32>
    %cst_17 = arith.constant dense<0.000000e+00> : vector<8xf32>
    %28 = vector.multi_reduction <add>, %27, %cst_17 [1] : vector<8x128xf32> to vector<8xf32>
    %29 = vector.shape_cast %28 : vector<8xf32> to vector<8x1xf32>
    %cst_18 = arith.constant 3.125000e-02 : f32
    %30 = vector.broadcast %cst_18 : f32 to vector<8x1xf32>
    %31 = arith.mulf %29, %30 : vector<8x1xf32>
    %32 = vector.broadcast %31 : vector<8x1xf32> to vector<8x128xf32>
    %33 = arith.subf %27, %32 : vector<8x128xf32>
    %34 = arith.mulf %33, %33 : vector<8x128xf32>
    %cst_19 = arith.constant dense<0.000000e+00> : vector<8xf32>
    %35 = vector.multi_reduction <add>, %34, %cst_19 [1] : vector<8x128xf32> to vector<8xf32>
    %36 = vector.shape_cast %35 : vector<8xf32> to vector<8x1xf32>
    %37 = arith.mulf %31, %31 : vector<8x1xf32>
    %cst_20 = arith.constant 9.600000e+01 : f32
    %38 = vector.broadcast %cst_20 : f32 to vector<8x1xf32>
    %39 = arith.mulf %38, %37 : vector<8x1xf32>
    %40 = arith.subf %36, %39 : vector<8x1xf32>
    %cst_21 = arith.constant 0.0322580636 : f32
    %41 = vector.broadcast %cst_21 : f32 to vector<8x1xf32>
    %42 = arith.mulf %40, %41 : vector<8x1xf32>
    %43 = math.sqrt %42 : vector<8x1xf32>
    %cst_22 = arith.constant 9.99999997E-7 : f32
    %44 = vector.broadcast %cst_22 : f32 to vector<8x1xf32>
    %45 = arith.addf %43, %44 : vector<8x1xf32>
    %cst_23 = arith.constant 1.000000e+00 : f32
    %46 = vector.broadcast %cst_23 : f32 to vector<8x1xf32>
    %47 = arith.divf %46, %45 : vector<8x1xf32>
    %c0_24 = arith.constant 0 : index
    %c0_25 = arith.constant 0 : index
    %48 = vector.load %arg5[%c0_24, %c0_25] : memref<1x1xf32, #tpu.memory_space<vmem>>, vector<1x1xf32>
    %49 = vector.extract %48[0, 0] : f32 from vector<1x1xf32>
    %50 = vector.broadcast %49 : f32 to vector<8x128xf32>
    %51 = arith.mulf %50, %33 : vector<8x128xf32>
    %52 = vector.broadcast %47 : vector<8x1xf32> to vector<8x128xf32>
    %53 = arith.mulf %51, %52 : vector<8x128xf32>
    %c0_26 = arith.constant 0 : index
    %c0_27 = arith.constant 0 : index
    %54 = vector.load %arg6[%c0_26, %c0_27] : memref<1x1xf32, #tpu.memory_space<vmem>>, vector<1x1xf32>
    %55 = vector.extract %54[0, 0] : f32 from vector<1x1xf32>
    %56 = vector.broadcast %55 : f32 to vector<8x128xf32>
    %57 = arith.addf %53, %56 : vector<8x128xf32>
    %c0_28 = arith.constant 0 : index
    %c0_29 = arith.constant 0 : index
    %58 = vector.load %arg7[%c0_28, %c0_29] : memref<8x128xf32, #tpu.memory_space<vmem>>, vector<8x128xf32>
    tpu.vector_store %arg7[%c0_28, %c0_29], %57 {strides = array<i32>} : memref<8x128xf32, #tpu.memory_space<vmem>>, vector<8x128xf32>,
    return
  }
  func.func @transform_0(%arg0: i32) -> (i32, i32) {
    %c0_i32 = arith.constant 0 : i32
    %c0_i32_0 = arith.constant 0 : i32
    return %arg0, %c0_i32 : i32, i32
  }
  func.func @transform_1(%arg0: i32) -> (i32, i32) {
    %c0_i32 = arith.constant 0 : i32
    %c0_i32_0 = arith.constant 0 : i32
    return %arg0, %c0_i32 : i32, i32
  }
  func.func @transform_2(%arg0: i32) -> (i32, i32, i32) {
    %c0_i32 = arith.constant 0 : i32
    %c0_i32_0 = arith.constant 0 : i32
    %c0_i32_1 = arith.constant 0 : i32
    %c0_i32_2 = arith.constant 0 : i32
    return %c0_i32, %c0_i32_0, %c0_i32_1 : i32, i32, i32
  }
  func.func @transform_3(%arg0: i32) -> (i32, i32, i32) {
    %c0_i32 = arith.constant 0 : i32
    %c0_i32_0 = arith.constant 0 : i32
    %c0_i32_1 = arith.constant 0 : i32
    %c0_i32_2 = arith.constant 0 : i32
    return %c0_i32, %c0_i32_0, %c0_i32_1 : i32, i32, i32
  }
  func.func @transform_4(%arg0: i32) -> (i32, i32) {
    %c0_i32 = arith.constant 0 : i32
    %c0_i32_0 = arith.constant 0 : i32
    %c0_i32_1 = arith.constant 0 : i32
    return %c0_i32, %c0_i32_0 : i32, i32
  }
  func.func @transform_5(%arg0: i32) -> (i32, i32) {
    %c0_i32 = arith.constant 0 : i32
    %c0_i32_0 = arith.constant 0 : i32
    %c0_i32_1 = arith.constant 0 : i32
    return %c0_i32, %c0_i32_0 : i32, i32
  }
  func.func @transform_6(%arg0: i32) -> (i32, i32) {
    %c0_i32 = arith.constant 0 : i32
    %c0_i32_0 = arith.constant 0 : i32
    return %arg0, %c0_i32 : i32, i32
  }
}

</mosaic_0001>

<bundles_post_ra>
// kernel: tpu_custom_call.1
= control target key start
LH: loop header
LB: loop body
LE: loop exit
PB: predicated region body
PF: predicated region fallthrough
CT: control target
= control target key end

     0   :  { %s1028_s0 = inlined_call_operand.vmem [shape: f32[16,128], index: 0, kind: input, shape index: {}]   ;;  %s1029_s1 = inlined_call_operand.vmem [shape: f32[16,1], index: 1, kind: input, shape index: {}]   ;;  %s1030_s2 = inlined_call_operand.hbm [shape: bf16[2,128,128], index: 2, kind: input, shape index: {}]   ;;  %s1031_s3 = inlined_call_operand.vmem [shape: f32[2,1,128], index: 3, kind: input, shape index: {}]   ;;  %s1032_s4 = inlined_call_operand.<no memory space> [shape: f32[1,1], index: 4, kind: input, shape index: {}]   ;;  %s1033_s6 = inlined_call_operand.hbm [shape: f32[16,128], index: 6, kind: output, shape index: {}]   ;;  %s1034_s5 = inlined_call_operand.<no memory space> [shape: f32[1,1], index: 5, kind: input, shape index: {}]  }
   0x1   :  { %v11_v0 = vstv %s1032_s4  ;;  %v13_v1 = vstv %s1034_s5 }
   0x2   :  { %12 = vst [vmem:[#allocation2] sm:$0x1] %v11_v0 }
   0x3   :  { %14 = vst [vmem:[#allocation3] sm:$0x1] %v13_v1 }
   0x4   :  { %15 = vsyncpa [#allocation5], 0 }
   0x5   :  { %16 = vsyncpa [#allocation6], 0 }
   0x6   :  { %18 = vsyncpa [#allocation6 + $0x1], 0  ;;  %s913_s25 = smov 0   ;;  %s915_s26 = smov 0  }
   0x7   :  { %s917_s27 = smov 0   ;;  %s919_s28 = smov 0  }
   0x8 LB: > { %s934_s4 = sadd.s32 4294967295, %s866_s28   ;;  %s612_s5 = sadd.s32 4294967294, %s866_s28   ;;  %s866_s28 = sphi %s919_s28, %s1040_s28   ;;  %s862_s27 = sphi %s917_s27, %s1039_s27   ;;  %s858_s26 = sphi %s915_s26, %s1038_s26   ;;  %s854_s25 = sphi %s913_s25, %s1037_s25  }
   0x9   : > { %s938_s29 = sadd.s32 1, %s866_s28   ;;  %s167_s30 = sadd.s32 1, %s862_s27 }
   0xa   : > { %s164_s7 = ssub.s32 %s866_s28, %s938_s29  ;;  %p177_p0 = scmp.ne.s32.totalorder %s862_s27, %s858_s26 }
   0xb   : > { %p165_p1 = scmp.eq.s32.totalorder %s164_s7, 0  ;;  %p178_p2 = scmp.eq.s32.totalorder %s934_s4, 1 }
   0xc   : > { %p183_p3 = scmp.ne.s32.totalorder %s858_s26, %s854_s25  ;;  %p184_p4 = scmp.eq.s32.totalorder %s612_s5, 1 }
   0xd   : > { %s949_s8 = scalar_select %p165_p1, %s862_s27, %s167_s30  }
   0xe   : > { %p951_p5 = por %p178_p2, %p177_p0  ;;  %p955_p6 = por %p184_p4, %p183_p3 }
   0xf   : > { %p613_p7 = scmp.ge.s32.totalorder %s866_s28, 1  ;;  %p191_p8 = scmp.lt.s32.totalorder %s866_s28, 3 }
  0x10   : > { %p724_p9 = scmp.eq.s32.totalorder %s934_s4, 0  ;;  %s202_s13 = sshll.u32 %s1030_s2, 4  ;;  %s203_s13 = int_to_ptr.hbm [resolvable:$true] %s202_s13 }
  0x11   : > { %p192_p10 = pnand %p613_p7, %p191_p8  ;;  %s868_s14 = smov [#allocation4]  }
  0x12   : > { %s204_s15 = sshll.u32 %s868_s14, 4  ;;  %s869_s16 = smov 64   ;;  %s205_s15 = int_to_ptr.vmem [resolvable:$true] %s204_s15 }
  0x13   : > { %p716_p11 = pneg %p192_p10  ;;  %s870_s17 = smov 4  }
  0x14   : > { %243 = sbr.rel (%p192_p10) target bundleno = 617 (0x269), region = 44 }
  0x15   : > { %p717_p12 = pnand %p724_p9, %p716_p11 }
  0x17   : > { %719 = dma.hbm_to_vmem [thread:$0]  (!%p717_p12), %s203_s13, 2048, %s205_s15, [#allocation5], %s869_s16, %s869_s16, %s870_s17  }
  0x19   : > { %845 = dma.done.wait (%p724_p9), [#allocation5], 2048  }
  0x1a   : > { %847 = vsyncadd (%p724_p9), [#allocation5], 4294965248  ;;  %p277_p13 = scmp.lt.s32.totalorder %s934_s4, 1  ;;  %v697_v2 = vld [vmem:[#allocation4 + $0x38] sm:$0xff]  ;;  %v696_v3 = vld [vmem:[#allocation4 + $0x30] sm:$0xff]  ;;  %v871_v4 = vmov 0  }
  0x1b   : > { %356 = vmatpush.bf16.msra.mxu0 %v697_v2  ;;  %763 = vset.pattern.permute.xlu0 %v871_v4  ;;  %v705_v6 = vld [vmem:[#allocation4 + $0x78] sm:$0xff]  ;;  %v704_v7 = vld [vmem:[#allocation4 + $0x70] sm:$0xff]  ;;  %v695_v8 = vld [vmem:[#allocation4 + $0x28] sm:$0xff]  ;;  %s274_s13 = sand.u32 1, %s858_s26   ;;  %s687_s16 = sshll.u32 %s934_s4, 3 }
  0x1c   : > { %s973_s18 = scalar_select %p277_p13, %s934_s4, 1  ;;  %448 = vmatpush.bf16.msra.mxu1 %v705_v6  ;;  %v703_v9 = vld [vmem:[#allocation4 + $0x68] sm:$0xff]  ;;  %v694_v10 = vld [vmem:[#allocation4 + $0x20] sm:$0xff]  ;;  %v693_v12 = vld [vmem:[#allocation4 + $0x18] sm:$0xff] }
  0x1d   : > { %v702_v11 = vld [vmem:[#allocation4 + $0x60] sm:$0xff]  ;;  %v701_v13 = vld [vmem:[#allocation4 + $0x58] sm:$0xff]  ;;  %v692_v14 = vld [vmem:[#allocation4 + $0x10] sm:$0xff]  ;;  %s618_s15 = sshll.u32 %s274_s13, 3  ;;  %s524_s20 = scalar_lea.hbm %s1033_s6, %s687_s16 }
  0x1e   : > { %s619_s19 = sshll.u32 %s973_s18, 3  ;;  %v691_v15 = vld [vmem:[#allocation4 + $0x8] sm:$0xff]  ;;  %v690_v16 = vld [vmem:[#allocation4] sm:$0xff]  ;;  %v700_v19 = vld [vmem:[#allocation4 + $0x50] sm:$0xff]  ;;  %s276_s4 = scalar_lea.vmem [#allocation7], %s618_s15 }
  0x1f   : > { %s284_s22 = scalar_lea.vmem %s1029_s1, %s619_s19  ;;  %357 = vmatpush.bf16.msra.mxu0 %v696_v3  ;;  %s280_s5 = scalar_lea.vmem %s1028_s0, %s619_s19  ;;  %v699_v20 = vld [vmem:[#allocation4 + $0x48] sm:$0xff]  ;;  %v698_v21 = vld [vmem:[#allocation4 + $0x40] sm:$0xff]  ;;  %v764_v22 = vld [vmem:[%s1031_s3] ss:$0 sm:$0xff] }
  0x20   : > { %v286_v5 = vld [vmem:[%s284_s22] sm:$0xff]  ;;  %449 = vmatpush.bf16.msra.mxu1 %v704_v7  ;;  %s526_s21 = sshll.u32 %s276_s4, 4  ;;  %s528_s22 = sshll.u32 %s524_s20, 4  ;;  %s527_s21 = int_to_ptr.vmem [resolvable:$true] %s526_s21  ;;  %s529_s22 = int_to_ptr.hbm [resolvable:$true] %s528_s22 }
  0x21   : > { %372 = vperm.xlu0 %763, %v286_v5   ;;  %v285_v17 = vld [vmem:[%s280_s5] sm:$0xff]  ;;  %s514_s23 = scalar_lea.sflag [#allocation6], %s274_s13  ;;  %s814_s24 = sshra.s32 %s529_s22, 4  ;;  %s815_s24 = int_to_ptr.hbm [resolvable:$true] %s814_s24 }
  0x22   : > { %v287_v18 = vpack.c.bf16 %v285_v17, %v285_v17  ;;  %v503_v31 = vld [vmem:[#allocation2] sm:$0x1]  ;;  %v765_v32 = vld [vmem:[%s1031_s3 + $0x1] ss:$0 sm:$0xff]  ;;  %s816_s5 = scalar_lea.hbm %s815_s24, 8  ;;  %s820_s11 = scalar_lea.hbm %s1033_s6, 16 }
  0x23   : > { %358 = vmatpush.bf16.msra.mxu0 %v695_v8  ;;  %706 = vpush %v503_v31  ;;  %v508_v39 = vld [vmem:[#allocation3] sm:$0x1]  ;;  %p817_p0 = scmp.ne.s32.totalorder %s815_s24, %s816_s5  ;;  %p821_p3 = scmp.lt.s32.totalorder %s815_s24, %s1033_s6 }
  0x24   : > { %450 = vmatpush.bf16.msra.mxu1 %v703_v9  ;;  %708 = vpush %v508_v39  ;;  %p822_p4 = scmp.lt.s32.totalorder %s820_s11, %s816_s5 }
  0x25   : > { %p818_p1 = pnand %p817_p0, %p951_p5 }
  0x26   : > { %p823_p7 = por %p822_p4, %p821_p3 }
  0x27   : > { %359 = vmatpush.bf16.msra.mxu0 %v694_v10  ;;  %p819_p2 = pneg %p818_p1 }
  0x28   : > { %451 = vmatpush.bf16.msra.mxu1 %v702_v11 }
  0x29   : > { %p824_p8 = pnand %p823_p7, %p819_p2 }
  0x2b   : > { %360 = vmatpush.bf16.msra.mxu0 %v693_v12 }
  0x2c   : > { %452 = vmatpush.bf16.msra.mxu1 %v701_v13 }
  0x2f   : > { %361 = vmatpush.bf16.msra.mxu0 %v692_v14 }
  0x30   : > { %453 = vmatpush.bf16.msra.mxu1 %v700_v19 }
  0x33   : > { %362 = vmatpush.bf16.msra.mxu0 %v691_v15 }
  0x34   : > { %454 = vmatpush.bf16.msra.mxu1 %v699_v20 }
  0x37   : > { %363 = vmatpush.bf16.msra.mxu0 %v690_v16 }
  0x38   : > { %455 = vmatpush.bf16.msra.mxu1 %v698_v21 }
  0x3a   : > { %364 = vmatmul.bf16.vlgmr.msra.gmra.mxu0 %v287_v18 }
  0x54   : > { %s707_s14 = spop %706 }
  0x55   : > { %v505_v2 = vstv %s707_s14  ;;  %s709_s17 = spop %708 }
  0x56   : > { %v510_v8 = vstv %s709_s17 }
  0x93   : > { %v373_v25 = vpop.permute.xlu0 %372 }
  0xb7   : > { %v365_v23 = vpop.f32.mrf.mxu0 }
  0xb8   : > { %v366_v24 = vadd.f32 %v764_v22, %v365_v23 }
  0xba   : > { %v369_v26 = vmax.f32 %v366_v24, 0.0 }
  0xbc   : > { %v375_v27 = vmul.f32 %v373_v25, %v369_v26 }
  0xbe   : > { %v376_v28 = vadd.f32 %v375_v27, %v285_v17 }
  0xbf   : > { %v367_v29 = vpop.f32.mrf.mxu0 }
  0xc0   : > { %v377_v30 = vpack.c.bf16 %v376_v28, %v376_v28 }
  0xc2   : > { %456 = vmatmul.bf16.vlgmr.msra.gmra.mxu1 %v377_v30 }
 0x13f   : > { %v457_v33 = vpop.f32.mrf.mxu1 }
 0x140   : > { %v458_v34 = vadd.f32 %v765_v32, %v457_v33 }
 0x142   : > { %v461_v35 = vmax.f32 %v458_v34, 0.0 }
 0x144   : > { %v462_v36 = vmul.f32 %v461_v35, %v373_v25 }
 0x146   : > { %v463_v37 = vadd.f32 %v462_v36, %v376_v28 }
 0x147   : > { %v459_v38 = vpop.f32.mrf.mxu1 }
 0x148   : > { %464 = vadd.xlane.f32.xlu0 %v463_v37 }
 0x1bb   : > { %v465_v40 = vpop.xlane.xlu0 %464 }
 0x1bc   : > { %v466_v41 = vmul.f32 0.03125, %v465_v40 }
 0x1be   : > { %v467_v42 = vsub.f32 %v463_v37, %v466_v41  ;;  %v471_v44 = vmul.f32 %v466_v41, %v466_v41 }
 0x1c0   : > { %v468_v43 = vmul.f32 %v467_v42, %v467_v42  ;;  %v472_v45 = vmul.f32 96.0, %v471_v44  ;;  %v506_v5 = vmul.f32 %v505_v2, %v467_v42 }
 0x1c2   : > { %469 = vadd.xlane.f32.xlu1 %v468_v43 }
 0x235   : > { %v470_v46 = vpop.xlane.xlu1 %469 }
 0x236   : > { %v473_v47 = vsub.f32 %v470_v46, %v472_v45 }
 0x238   : > { %v474_v48 = vmul.f32 0.032258064, %v473_v47 }
 0x23a   : > { %766 = vrsqrt.f32 %v474_v48  ;;  %vm482_vm0 = vcmp.eq.f32.partialorder %v474_v48, inf  ;;  %v485_v56 = vand.u32 2147483648, %v474_v48  ;;  %vm484_vm1 = vcmp.eq.f32.partialorder %v474_v48, 0.0 }
 0x240   : > { %v767_v49 = vpop.eup %766 }
 0x241   : > { %v476_v50 = vmul.f32 %v767_v49, %v474_v48 }
 0x243   : > { %v477_v51 = vmul.f32 %v767_v49, %v476_v50 }
 0x245   : > { %v478_v52 = vmul.f32 0.5, %v477_v51 }
 0x247   : > { %v479_v53 = vsub.f32 1.5, %v478_v52 }
 0x249   : > { %v480_v54 = vmul.f32 %v767_v49, %v479_v53 }
 0x24b   : > { %v481_v55 = vmul.f32 %v480_v54, %v474_v48 }
 0x24d   : > { %v483_v57 = vsel %vm482_vm0, %v474_v48, %v481_v55 }
 0x24e   : > { %v486_v58 = vsel %vm484_vm1, %v485_v56, %v483_v57 }
 0x24f   : > { %v487_v59 = vadd.f32 1e-06, %v486_v58 }
 0x251   : > { %768 = vrcp.f32 %v487_v59  ;;  %v499_v63 = vand.u32 2147483648, %v487_v59  ;;  %v497_v1 = vand.u32 2147483647, %v487_v59  ;;  %vm493_vm3 = vweird.f32 %v487_v59 }
 0x253   : > { %v500_v4 = vor.u32 1.1754944e-38, %v499_v63  ;;  %vm498_vm5 = vcmp.eq.f32.partialorder %v497_v1, 8.507059e+37 }
 0x257   : > { %v769_v60 = vpop.eup %768 }
 0x258   : > { %v489_v61 = vmul.f32 %v769_v60, %v487_v59  ;;  %vm494_vm2 = vweird.f32 %v769_v60 }
 0x259   : > { %vm495_vm4 = vmor %vm493_vm3, %vm494_vm2 }
 0x25a   : > { %v490_v62 = vsub.f32 1.0, %v489_v61 }
 0x25c   : > { %v491_v0 = vmul.f32 %v769_v60, %v490_v62 }
 0x25e   : > { %v492_v3 = vadd.f32 %v769_v60, %v491_v0 }
 0x260   : > { %v496_v6 = vsel %vm495_vm4, %v769_v60, %v492_v3 }
 0x261   : > { %v501_v7 = vsel %vm498_vm5, %v500_v4, %v496_v6 }
 0x262   : > { %v507_v9 = vmul.f32 %v506_v5, %v501_v7 }
 0x264   : > { %v511_v10 = vadd.f32 %v510_v8, %v507_v9 }
 0x266   : > { %512 = vst [vmem:[%s276_s4] sm:$0xff] %v511_v10 }
 0x267   : > { %827 = shalt.err (!%p824_p8)
}
 0x268   : > { %714 = dma.vmem_to_hbm [thread:$0]  (%p951_p5), %s527_s21, 128, %s529_s22, %s514_s23  }
 0x269 PF: > { %p726_p9 = scmp.ge.s32.totalorder %s866_s28, 2  ;;  %s540_s13 = sand.u32 1, %s854_s25  }
 0x26a   : > { %s541_s15 = scalar_lea.sflag [#allocation6], %s540_s13 }
 0x26b   : > { %p721_p10 = pnand %p726_p9, %p955_p6 }
 0x26d   : > { %p722_p11 = pneg %p721_p10 }
 0x26f   : > { %849 = dma.done.wait (%p722_p11), %s541_s15, 128  }
 0x270   : > { %851 = vsyncadd (%p722_p11), %s541_s15, 4294967168  ;;  %p21_p12 = scmp.ge.s32.totalorder %s938_s29, 4   ;;  %s1037_s25 = smov %s858_s26 }
 0x271   : > { %s1038_s26 = smov %s862_s27  ;;  %s1039_s27 = smov %s949_s8 }
 0x272   : > { %s1040_s28 = smov %s938_s29  ;;  %23 = sbr.rel (!%p21_p12) target bundleno = 8 (0x8), region = 89 }
 0x277   :  { %547 = vsyncpa [#allocation5], 1 }
 0x278   :  { %549 = vsyncpa [#allocation5 + $0x1], 1 }
 0x279   :  { %550 = vsyncpa [#allocation6], 1 }
 0x27a   :  { %552 = vsyncpa [#allocation6 + $0x1], 1 }

// kernel: tpu_custom_call.1
= control target key start
LH: loop header
LB: loop body
LE: loop exit
PB: predicated region body
PF: predicated region fallthrough
CT: control target
= control target key end

     0   :  { %s1028_s0 = inlined_call_operand.vmem [shape: f32[16,128], index: 0, kind: input, shape index: {}]   ;;  %s1029_s1 = inlined_call_operand.vmem [shape: f32[16,1], index: 1, kind: input, shape index: {}]   ;;  %s1030_s2 = inlined_call_operand.hbm [shape: bf16[2,128,128], index: 2, kind: input, shape index: {}]   ;;  %s1031_s3 = inlined_call_operand.vmem [shape: f32[2,1,128], index: 3, kind: input, shape index: {}]   ;;  %s1032_s4 = inlined_call_operand.<no memory space> [shape: f32[1,1], index: 4, kind: input, shape index: {}]   ;;  %s1033_s6 = inlined_call_operand.hbm [shape: f32[16,128], index: 6, kind: output, shape index: {}]   ;;  %s1034_s5 = inlined_call_operand.<no memory space> [shape: f32[1,1], index: 5, kind: input, shape index: {}]  }
   0x1   :  { %v11_v0 = vstv %s1032_s4  ;;  %v13_v1 = vstv %s1034_s5 }
   0x2   :  { %12 = vst [vmem:[#allocation2] sm:$0x1] %v11_v0 }
   0x3   :  { %14 = vst [vmem:[#allocation3] sm:$0x1] %v13_v1 }
   0x4   :  { %15 = vsyncpa [#allocation5], 0 }
   0x5   :  { %16 = vsyncpa [#allocation6], 0 }
   0x6   :  { %18 = vsyncpa [#allocation6 + $0x1], 0  ;;  %s913_s25 = smov 0   ;;  %s915_s26 = smov 0  }
   0x7   :  { %s917_s27 = smov 0   ;;  %s919_s28 = smov 0  }
   0x8 LB: > { %s934_s4 = sadd.s32 4294967295, %s866_s28   ;;  %s612_s5 = sadd.s32 4294967294, %s866_s28   ;;  %s866_s28 = sphi %s919_s28, %s1040_s28   ;;  %s862_s27 = sphi %s917_s27, %s1039_s27   ;;  %s858_s26 = sphi %s915_s26, %s1038_s26   ;;  %s854_s25 = sphi %s913_s25, %s1037_s25  }
   0x9   : > { %s938_s29 = sadd.s32 1, %s866_s28   ;;  %s167_s30 = sadd.s32 1, %s862_s27 }
   0xa   : > { %s164_s7 = ssub.s32 %s866_s28, %s938_s29  ;;  %p177_p0 = scmp.ne.s32.totalorder %s862_s27, %s858_s26 }
   0xb   : > { %p165_p1 = scmp.eq.s32.totalorder %s164_s7, 0  ;;  %p178_p2 = scmp.eq.s32.totalorder %s934_s4, 1 }
   0xc   : > { %p183_p3 = scmp.ne.s32.totalorder %s858_s26, %s854_s25  ;;  %p184_p4 = scmp.eq.s32.totalorder %s612_s5, 1 }
   0xd   : > { %s949_s8 = scalar_select %p165_p1, %s862_s27, %s167_s30  }
   0xe   : > { %p951_p5 = por %p178_p2, %p177_p0  ;;  %p955_p6 = por %p184_p4, %p183_p3 }
   0xf   : > { %p613_p7 = scmp.ge.s32.totalorder %s866_s28, 1  ;;  %p191_p8 = scmp.lt.s32.totalorder %s866_s28, 3 }
  0x10   : > { %p724_p9 = scmp.eq.s32.totalorder %s934_s4, 0  ;;  %s202_s13 = sshll.u32 %s1030_s2, 4  ;;  %s203_s13 = int_to_ptr.hbm [resolvable:$true] %s202_s13 }
  0x11   : > { %p192_p10 = pnand %p613_p7, %p191_p8  ;;  %s868_s14 = smov [#allocation4]  }
  0x12   : > { %s204_s15 = sshll.u32 %s868_s14, 4  ;;  %s869_s16 = smov 64   ;;  %s205_s15 = int_to_ptr.vmem [resolvable:$true] %s204_s15 }
  0x13   : > { %p716_p11 = pneg %p192_p10  ;;  %s870_s17 = smov 4  }
  0x14   : > { %243 = sbr.rel (%p192_p10) target bundleno = 617 (0x269), region = 44 }
  0x15   : > { %p717_p12 = pnand %p724_p9, %p716_p11 }
  0x17   : > { %719 = dma.hbm_to_vmem [thread:$0]  (!%p717_p12), %s203_s13, 2048, %s205_s15, [#allocation5], %s869_s16, %s869_s16, %s870_s17  }
  0x19   : > { %845 = dma.done.wait (%p724_p9), [#allocation5], 2048  }
  0x1a   : > { %847 = vsyncadd (%p724_p9), [#allocation5], 4294965248  ;;  %p277_p13 = scmp.lt.s32.totalorder %s934_s4, 1  ;;  %v697_v2 = vld [vmem:[#allocation4 + $0x38] sm:$0xff]  ;;  %v696_v3 = vld [vmem:[#allocation4 + $0x30] sm:$0xff]  ;;  %v871_v4 = vmov 0  }
  0x1b   : > { %356 = vmatpush.bf16.msra.mxu0 %v697_v2  ;;  %763 = vset.pattern.permute.xlu0 %v871_v4  ;;  %v705_v6 = vld [vmem:[#allocation4 + $0x78] sm:$0xff]  ;;  %v704_v7 = vld [vmem:[#allocation4 + $0x70] sm:$0xff]  ;;  %v695_v8 = vld [vmem:[#allocation4 + $0x28] sm:$0xff]  ;;  %s274_s13 = sand.u32 1, %s858_s26   ;;  %s687_s16 = sshll.u32 %s934_s4, 3 }
  0x1c   : > { %s973_s18 = scalar_select %p277_p13, %s934_s4, 1  ;;  %448 = vmatpush.bf16.msra.mxu1 %v705_v6  ;;  %v703_v9 = vld [vmem:[#allocation4 + $0x68] sm:$0xff]  ;;  %v694_v10 = vld [vmem:[#allocation4 + $0x20] sm:$0xff]  ;;  %v693_v12 = vld [vmem:[#allocation4 + $0x18] sm:$0xff] }
  0x1d   : > { %v702_v11 = vld [vmem:[#allocation4 + $0x60] sm:$0xff]  ;;  %v701_v13 = vld [vmem:[#allocation4 + $0x58] sm:$0xff]  ;;  %v692_v14 = vld [vmem:[#allocation4 + $0x10] sm:$0xff]  ;;  %s618_s15 = sshll.u32 %s274_s13, 3  ;;  %s524_s20 = scalar_lea.hbm %s1033_s6, %s687_s16 }
  0x1e   : > { %s619_s19 = sshll.u32 %s973_s18, 3  ;;  %v691_v15 = vld [vmem:[#allocation4 + $0x8] sm:$0xff]  ;;  %v690_v16 = vld [vmem:[#allocation4] sm:$0xff]  ;;  %v700_v19 = vld [vmem:[#allocation4 + $0x50] sm:$0xff]  ;;  %s276_s4 = scalar_lea.vmem [#allocation7], %s618_s15 }
  0x1f   : > { %s284_s22 = scalar_lea.vmem %s1029_s1, %s619_s19  ;;  %357 = vmatpush.bf16.msra.mxu0 %v696_v3  ;;  %s280_s5 = scalar_lea.vmem %s1028_s0, %s619_s19  ;;  %v699_v20 = vld [vmem:[#allocation4 + $0x48] sm:$0xff]  ;;  %v698_v21 = vld [vmem:[#allocation4 + $0x40] sm:$0xff]  ;;  %v764_v22 = vld [vmem:[%s1031_s3] ss:$0 sm:$0xff] }
  0x20   : > { %v286_v5 = vld [vmem:[%s284_s22] sm:$0xff]  ;;  %449 = vmatpush.bf16.msra.mxu1 %v704_v7  ;;  %s526_s21 = sshll.u32 %s276_s4, 4  ;;  %s528_s22 = sshll.u32 %s524_s20, 4  ;;  %s527_s21 = int_to_ptr.vmem [resolvable:$true] %s526_s21  ;;  %s529_s22 = int_to_ptr.hbm [resolvable:$true] %s528_s22 }
  0x21   : > { %372 = vperm.xlu0 %763, %v286_v5   ;;  %v285_v17 = vld [vmem:[%s280_s5] sm:$0xff]  ;;  %s514_s23 = scalar_lea.sflag [#allocation6], %s274_s13  ;;  %s814_s24 = sshra.s32 %s529_s22, 4  ;;  %s815_s24 = int_to_ptr.hbm [resolvable:$true] %s814_s24 }
  0x22   : > { %v287_v18 = vpack.c.bf16 %v285_v17, %v285_v17  ;;  %v503_v31 = vld [vmem:[#allocation2] sm:$0x1]  ;;  %v765_v32 = vld [vmem:[%s1031_s3 + $0x1] ss:$0 sm:$0xff]  ;;  %s816_s5 = scalar_lea.hbm %s815_s24, 8  ;;  %s820_s11 = scalar_lea.hbm %s1033_s6, 16 }
  0x23   : > { %358 = vmatpush.bf16.msra.mxu0 %v695_v8  ;;  %706 = vpush %v503_v31  ;;  %v508_v39 = vld [vmem:[#allocation3] sm:$0x1]  ;;  %p817_p0 = scmp.ne.s32.totalorder %s815_s24, %s816_s5  ;;  %p821_p3 = scmp.lt.s32.totalorder %s815_s24, %s1033_s6 }
  0x24   : > { %450 = vmatpush.bf16.msra.mxu1 %v703_v9  ;;  %708 = vpush %v508_v39  ;;  %p822_p4 = scmp.lt.s32.totalorder %s820_s11, %s816_s5 }
  0x25   : > { %p818_p1 = pnand %p817_p0, %p951_p5 }
  0x26   : > { %p823_p7 = por %p822_p4, %p821_p3 }
  0x27   : > { %359 = vmatpush.bf16.msra.mxu0 %v694_v10  ;;  %p819_p2 = pneg %p818_p1 }
  0x28   : > { %451 = vmatpush.bf16.msra.mxu1 %v702_v11 }
  0x29   : > { %p824_p8 = pnand %p823_p7, %p819_p2 }
  0x2b   : > { %360 = vmatpush.bf16.msra.mxu0 %v693_v12 }
  0x2c   : > { %452 = vmatpush.bf16.msra.mxu1 %v701_v13 }
  0x2f   : > { %361 = vmatpush.bf16.msra.mxu0 %v692_v14 }
  0x30   : > { %453 = vmatpush.bf16.msra.mxu1 %v700_v19 }
  0x33   : > { %362 = vmatpush.bf16.msra.mxu0 %v691_v15 }
  0x34   : > { %454 = vmatpush.bf16.msra.mxu1 %v699_v20 }
  0x37   : > { %363 = vmatpush.bf16.msra.mxu0 %v690_v16 }
  0x38   : > { %455 = vmatpush.bf16.msra.mxu1 %v698_v21 }
  0x3a   : > { %364 = vmatmul.bf16.vlgmr.msra.gmra.mxu0 %v287_v18 }
  0x54   : > { %s707_s14 = spop %706 }
  0x55   : > { %v505_v2 = vstv %s707_s14  ;;  %s709_s17 = spop %708 }
  0x56   : > { %v510_v8 = vstv %s709_s17 }
  0x93   : > { %v373_v25 = vpop.permute.xlu0 %372 }
  0xb7   : > { %v365_v23 = vpop.f32.mrf.mxu0 }
  0xb8   : > { %v366_v24 = vadd.f32 %v764_v22, %v365_v23 }
  0xba   : > { %v369_v26 = vmax.f32 %v366_v24, 0.0 }
  0xbc   : > { %v375_v27 = vmul.f32 %v373_v25, %v369_v26 }
  0xbe   : > { %v376_v28 = vadd.f32 %v375_v27, %v285_v17 }
  0xbf   : > { %v367_v29 = vpop.f32.mrf.mxu0 }
  0xc0   : > { %v377_v30 = vpack.c.bf16 %v376_v28, %v376_v28 }
  0xc2   : > { %456 = vmatmul.bf16.vlgmr.msra.gmra.mxu1 %v377_v30 }
 0x13f   : > { %v457_v33 = vpop.f32.mrf.mxu1 }
 0x140   : > { %v458_v34 = vadd.f32 %v765_v32, %v457_v33 }
 0x142   : > { %v461_v35 = vmax.f32 %v458_v34, 0.0 }
 0x144   : > { %v462_v36 = vmul.f32 %v461_v35, %v373_v25 }
 0x146   : > { %v463_v37 = vadd.f32 %v462_v36, %v376_v28 }
 0x147   : > { %v459_v38 = vpop.f32.mrf.mxu1 }
 0x148   : > { %464 = vadd.xlane.f32.xlu0 %v463_v37 }
 0x1bb   : > { %v465_v40 = vpop.xlane.xlu0 %464 }
 0x1bc   : > { %v466_v41 = vmul.f32 0.03125, %v465_v40 }
 0x1be   : > { %v467_v42 = vsub.f32 %v463_v37, %v466_v41  ;;  %v471_v44 = vmul.f32 %v466_v41, %v466_v41 }
 0x1c0   : > { %v468_v43 = vmul.f32 %v467_v42, %v467_v42  ;;  %v472_v45 = vmul.f32 96.0, %v471_v44  ;;  %v506_v5 = vmul.f32 %v505_v2, %v467_v42 }
 0x1c2   : > { %469 = vadd.xlane.f32.xlu1 %v468_v43 }
 0x235   : > { %v470_v46 = vpop.xlane.xlu1 %469 }
 0x236   : > { %v473_v47 = vsub.f32 %v470_v46, %v472_v45 }
 0x238   : > { %v474_v48 = vmul.f32 0.032258064, %v473_v47 }
 0x23a   : > { %766 = vrsqrt.f32 %v474_v48  ;;  %vm482_vm0 = vcmp.eq.f32.partialorder %v474_v48, inf  ;;  %v485_v56 = vand.u32 2147483648, %v474_v48  ;;  %vm484_vm1 = vcmp.eq.f32.partialorder %v474_v48, 0.0 }
 0x240   : > { %v767_v49 = vpop.eup %766 }
 0x241   : > { %v476_v50 = vmul.f32 %v767_v49, %v474_v48 }
 0x243   : > { %v477_v51 = vmul.f32 %v767_v49, %v476_v50 }
 0x245   : > { %v478_v52 = vmul.f32 0.5, %v477_v51 }
 0x247   : > { %v479_v53 = vsub.f32 1.5, %v478_v52 }
 0x249   : > { %v480_v54 = vmul.f32 %v767_v49, %v479_v53 }
 0x24b   : > { %v481_v55 = vmul.f32 %v480_v54, %v474_v48 }
 0x24d   : > { %v483_v57 = vsel %vm482_vm0, %v474_v48, %v481_v55 }
 0x24e   : > { %v486_v58 = vsel %vm484_vm1, %v485_v56, %v483_v57 }
 0x24f   : > { %v487_v59 = vadd.f32 1e-06, %v486_v58 }
 0x251   : > { %768 = vrcp.f32 %v487_v59  ;;  %v499_v63 = vand.u32 2147483648, %v487_v59  ;;  %v497_v1 = vand.u32 2147483647, %v487_v59  ;;  %vm493_vm3 = vweird.f32 %v487_v59 }
 0x253   : > { %v500_v4 = vor.u32 1.1754944e-38, %v499_v63  ;;  %vm498_vm5 = vcmp.eq.f32.partialorder %v497_v1, 8.507059e+37 }
 0x257   : > { %v769_v60 = vpop.eup %768 }
 0x258   : > { %v489_v61 = vmul.f32 %v769_v60, %v487_v59  ;;  %vm494_vm2 = vweird.f32 %v769_v60 }
 0x259   : > { %vm495_vm4 = vmor %vm493_vm3, %vm494_vm2 }
 0x25a   : > { %v490_v62 = vsub.f32 1.0, %v489_v61 }
 0x25c   : > { %v491_v0 = vmul.f32 %v769_v60, %v490_v62 }
 0x25e   : > { %v492_v3 = vadd.f32 %v769_v60, %v491_v0 }
 0x260   : > { %v496_v6 = vsel %vm495_vm4, %v769_v60, %v492_v3 }
 0x261   : > { %v501_v7 = vsel %vm498_vm5, %v500_v4, %v496_v6 }
 0x262   : > { %v507_v9 = vmul.f32 %v506_v5, %v501_v7 }
 0x264   : > { %v511_v10 = vadd.f32 %v510_v8, %v507_v9 }
 0x266   : > { %512 = vst [vmem:[%s276_s4] sm:$0xff] %v511_v10 }
 0x267   : > { %827 = shalt.err (!%p824_p8)
}
 0x268   : > { %714 = dma.vmem_to_hbm [thread:$0]  (%p951_p5), %s527_s21, 128, %s529_s22, %s514_s23  }
 0x269 PF: > { %p726_p9 = scmp.ge.s32.totalorder %s866_s28, 2  ;;  %s540_s13 = sand.u32 1, %s854_s25  }
 0x26a   : > { %s541_s15 = scalar_lea.sflag [#allocation6], %s540_s13 }
 0x26b   : > { %p721_p10 = pnand %p726_p9, %p955_p6 }
 0x26d   : > { %p722_p11 = pneg %p721_p10 }
 0x26f   : > { %849 = dma.done.wait (%p722_p11), %s541_s15, 128  }
 0x270   : > { %851 = vsyncadd (%p722_p11), %s541_s15, 4294967168  ;;  %p21_p12 = scmp.ge.s32.totalorder %s938_s29, 4   ;;  %s1037_s25 = smov %s858_s26 }
 0x271   : > { %s1038_s26 = smov %s862_s27  ;;  %s1039_s27 = smov %s949_s8 }
 0x272   : > { %s1040_s28 = smov %s938_s29  ;;  %23 = sbr.rel (!%p21_p12) target bundleno = 8 (0x8), region = 89 }
 0x277   :  { %547 = vsyncpa [#allocation5], 1 }
 0x278   :  { %549 = vsyncpa [#allocation5 + $0x1], 1 }
 0x279   :  { %550 = vsyncpa [#allocation6], 1 }
 0x27a   :  { %552 = vsyncpa [#allocation6 + $0x1], 1 }

</bundles_post_ra>
